<compile_context>
chip_gen: v7x
topology: tpu7x:2x2x1
jax: 0.10.0
libtpu: 0.0.40
codegen_flags: <defaults>
</compile_context>

<pallas_src>
import functools
import math

import jax
import jax.numpy as jnp
from jax.experimental import pallas as pl
from jax.experimental.pallas import tpu as pltpu

_F32 = jnp.float32
_BF16 = jnp.bfloat16


def _default_exp_dtype():
    """bf16 exp on chips with a bf16 EUP (v6e / v7x); f32 elsewhere (v5e, older)."""
    kind = jax.devices()[0].device_kind.lower()
    if ("v6" in kind) or ("v7" in kind) or ("7x" in kind):
        return jnp.bfloat16
    return jnp.float32


def mha_flash_kernel(q_ref, kp_ref, vp_ref,
                     wq_ref, bq_ref, wm_ref, bm_ref,
                     out_ref,
                     qp_sc, m_sc, l_sc, acc_sc,
                     *, num_heads, head_dim, exp_dtype):
    H, D = num_heads, head_dim
    kv_i = pl.program_id(2)

    # ---- once per (batch, q-tile): project Q (scale pre-folded into wq/bq),
    # cache it D-major, and init the online-softmax state.
    @pl.when(kv_i == 0)
    def _init():
        q = q_ref[0]                                                   # (C, Tq) bf16
        qp = jnp.dot(wq_ref[...], q,
                     preferred_element_type=jnp.float32) + bq_ref[...]  # (C, Tq) f32
        tq = qp.shape[-1]
        # (C, Tq) -> (H, D, Tq): head-major & D-major; no transpose needed.
        qp_sc[...] = qp.reshape(H, D, tq).astype(_BF16)
        m_sc[...] = jnp.full(m_sc.shape, -jnp.inf, m_sc.dtype)
        l_sc[...] = jnp.zeros(l_sc.shape, l_sc.dtype)
        acc_sc[...] = jnp.zeros(acc_sc.shape, acc_sc.dtype)

    # ---- every kv step: stream a pre-projected K/V tile, online-softmax update.
    kp = kp_ref[0]                                                     # (H, D, Tk) bf16
    vp = vp_ref[0]                                                     # (H, D, Tk) bf16

    # scores[h, n, m]: single batched MXU contraction over d (both operands D-major).
    s = jnp.einsum('hdn,hdm->hnm', qp_sc[...], kp,
                   preferred_element_type=jnp.float32)                 # (H, Tq, Tk) f32

    m_prev = m_sc[...]                                                 # (H, Tq) f32
    m_new = jnp.maximum(m_prev, jnp.max(s, axis=-1))                   # (H, Tq)
    alpha = jnp.exp(m_prev - m_new)                                    # f32 (small)
    # Big exp: bf16 on v6e/v7x (bf16 EUP), f32 on v5e.  Row-sum accumulates in f32.
    p = jnp.exp((s - m_new[:, :, None]).astype(exp_dtype))             # (H, Tq, Tk)
    l_sc[...] = alpha * l_sc[...] + jnp.sum(p, axis=-1, dtype=jnp.float32)
    # pv[h, d, n]: lhs contracts its last dim, rhs is the standard transposed-RHS
    # flash pattern; output is already (H, D, Tq), so no result transpose.
    pv = jnp.einsum('hdm,hnm->hdn', vp, p.astype(_BF16),
                    preferred_element_type=jnp.float32)                # (H, D, Tq) f32
    acc_sc[...] = alpha[:, None, :] * acc_sc[...] + pv
    m_sc[...] = m_new

    # ---- last kv step: normalize and merge heads with the output 1x1 conv.
    @pl.when(kv_i == pl.num_programs(2) - 1)
    def _finalize():
        inv_l = pl.reciprocal(l_sc[...], approx=True)                  # (H, Tq) f32
        x = acc_sc[...] * inv_l[:, None, :]                            # (H, D, Tq) f32
        tq = x.shape[-1]
        x = x.reshape(H * D, tq)                                       # (C, Tq): free view
        out = jnp.dot(wm_ref[...], x.astype(_BF16),
                      preferred_element_type=jnp.float32) + bm_ref[...]
        out_ref[0] = out.astype(out_ref.dtype)


def multi_headed_attention(q, k, v, params, num_heads, *,
                           q_block=256, kv_block=512, out_dtype=jnp.float32):
    """params: wq, bq, wk, bk, wv, bv, wm, bm in the original PyTorch Conv1d layout.

    Returns the lazy output array (caller decides when to block).
    """
    B, C, N = q.shape
    assert C % num_heads == 0
    H = num_heads
    D = C // H

    tq = min(q_block, N)
    tk = min(kv_block, N)
    # TODO(synk): mask partial key tiles (scores before exp AND the row-sum) to
    # support sequence lengths not divisible by the tile sizes.
    assert N % tq == 0 and N % tk == 0, "sequence length must be divisible by the tile sizes"
    if tq != N:
        assert tq % 128 == 0
    if tk != N:
        assert tk % 128 == 0

    scale = 1.0 / math.sqrt(D)
    # PyTorch view(B, D, H, N) maps channel c -> (d = c // H, h = c % H).
    # Permute to head-major order c' = h*D + d so per-head slabs are free views.
    perm = jnp.arange(C).reshape(D, H).T.reshape(-1)

    # Q projection stays fused in the kernel; fold the 1/sqrt(D) scale here (once).
    wq = (params["wq"][perm, :] * scale).astype(_BF16)
    bq = (params["bq"][perm] * scale).reshape(C, 1).astype(_F32)
    wm = params["wm"][:, perm].astype(_BF16)
    bm = params["bm"].reshape(C, 1).astype(_F32)
    # TODO(synk): for very large C on v7x, move wq/wm to memory_space=pl.ANY and DMA
    # them into a shared scratch only inside the init/finalize branches.

    # ---- Hoisted K/V projections: once per call in XLA (f32), head-major bf16.
    def project_head_major(w, b, x):
        y = jnp.einsum('oc,bcn->bon', w[perm, :], x) + b[perm][None, :, None]
        return y.reshape(B, H, D, N).astype(_BF16)

    kp = project_head_major(params["wk"], params["bk"], k)
    vp = project_head_major(params["wv"], params["bv"], v)
    qb = q.astype(_BF16)   # raw Q streamed in bf16 (same precision as in-kernel cast)

    kernel = functools.partial(mha_flash_kernel, num_heads=H, head_dim=D,
                               exp_dtype=_default_exp_dtype())
    grid = (B, N // tq, N // tk)

    w_spec = pl.BlockSpec((C, C), lambda b, qi, ki: (0, 0))
    b_spec = pl.BlockSpec((C, 1), lambda b, qi, ki: (0, 0))

    return pl.pallas_call(
        kernel,
        out_shape=jax.ShapeDtypeStruct((B, C, N), out_dtype),
        grid_spec=pltpu.PrefetchScalarGridSpec(
            num_scalar_prefetch=0,
            grid=grid,
            in_specs=[
                pl.BlockSpec((1, C, tq), lambda b, qi, ki: (b, 0, qi)),        # raw q tile
                pl.BlockSpec((1, H, D, tk), lambda b, qi, ki: (b, 0, 0, ki)),  # projected K
                pl.BlockSpec((1, H, D, tk), lambda b, qi, ki: (b, 0, 0, ki)),  # projected V
                w_spec, b_spec,   # wq, bq (scale folded)
                w_spec, b_spec,   # wm, bm
            ],
            out_specs=pl.BlockSpec((1, C, tq), lambda b, qi, ki: (b, 0, qi)),
            scratch_shapes=[
                pltpu.VMEM((H, D, tq), _BF16),   # cached projected+scaled Q tile (D-major)
                pltpu.VMEM((H, tq), _F32),       # running max (lane-dense, no trailing 1)
                pltpu.VMEM((H, tq), _F32),       # running denominator
                pltpu.VMEM((H, D, tq), _F32),    # output accumulator (D-major)
            ],
        ),
        compiler_params=pltpu.CompilerParams(
            dimension_semantics=("parallel", "parallel", "arbitrary"),
            # Explicit budget that stays under v7x's 64 MiB physical VMEM.
            vmem_limit_bytes=48 * 1024 * 1024,
        ),
    )(qb, kp, vp, wq, bq, wm, bm)


def reference(q, k, v, params, num_heads):
    """Pure-JAX f32 reference mirroring the PyTorch forward."""
    B, C, N = q.shape
    D = C // num_heads

    def conv1x1(w, b, x):
        return jnp.einsum('oc,bcn->bon', w, x) + b[None, :, None]

    qp = conv1x1(params["wq"], params["bq"], q).reshape(B, D, num_heads, N)
    kp = conv1x1(params["wk"], params["bk"], k).reshape(B, D, num_heads, N)
    vp = conv1x1(params["wv"], params["bv"], v).reshape(B, D, num_heads, N)
    scores = jnp.einsum('bdhn,bdhm->bhnm', qp, kp) / (D ** 0.5)
    prob = jax.nn.softmax(scores, axis=-1)
    x = jnp.einsum('bhnm,bdhm->bdhn', prob, vp)
    return conv1x1(params["wm"], params["bm"], x.reshape(B, C, N))


if __name__ == "__main__":
    B, num_heads, d_model, N = 2, 4, 32, 16   # D = d_model // num_heads = 8

    key = jax.random.PRNGKey(0)
    keys = jax.random.split(key, 11)

    # Deterministic synthetic init (PyTorch Conv1d default: U(-1/sqrt(C), 1/sqrt(C))).
    # The PyTorch __init__ deep-copies `merge` into the three projections, so all
    # four convs start identical; the forward pass is agnostic to that, so we use
    # independent weights here.
    bound = 1.0 / math.sqrt(d_model)
    u = lambda k_, shape: jax.random.uniform(k_, shape, jnp.float32, -bound, bound)
    params = {
        "wq": u(keys[0], (d_model, d_model)), "bq": u(keys[1], (d_model,)),
        "wk": u(keys[2], (d_model, d_model)), "bk": u(keys[3], (d_model,)),
        "wv": u(keys[4], (d_model, d_model)), "bv": u(keys[5], (d_model,)),
        "wm": u(keys[6], (d_model, d_model)), "bm": u(keys[7], (d_model,)),
    }

    q = jax.random.normal(keys[8], (B, d_model, N), jnp.float32)
    k = jax.random.normal(keys[9], (B, d_model, N), jnp.float32)
    v = jax.random.normal(keys[10], (B, d_model, N), jnp.float32)

    out = multi_headed_attention(q, k, v, params, num_heads)
    out = jax.block_until_ready(out)

    ref = reference(q, k, v, params, num_heads)
    assert out.shape == (B, d_model, N)
    # Relaxed tolerance: MXU operands are bf16 (accumulation in f32).
    assert jnp.allclose(out, ref, rtol=2e-2, atol=2e-2), "mismatch vs reference"

    print("KERNEL_OK")
</pallas_src>

<mosaic_0001>
module attributes {stable_mosaic.version = 11 : i64} {
  func.func @mha_flash_kernel(%arg0: i32, %arg1: i32, %arg2: i32, %arg3: memref<1x32x16xbf16, #tpu.memory_space<vmem>>, %arg4: memref<1x4x8x16xbf16, #tpu.memory_space<vmem>>, %arg5: memref<1x4x8x16xbf16, #tpu.memory_space<vmem>>, %arg6: memref<32x32xbf16, #tpu.memory_space<vmem>>, %arg7: memref<32x1xf32, #tpu.memory_space<vmem>>, %arg8: memref<32x32xbf16, #tpu.memory_space<vmem>>, %arg9: memref<32x1xf32, #tpu.memory_space<vmem>>, %arg10: memref<1x32x16xf32, #tpu.memory_space<vmem>>, %arg11: memref<4x8x16xbf16, #tpu.memory_space<vmem>>, %arg12: memref<4x16xf32, #tpu.memory_space<vmem>>, %arg13: memref<4x16xf32, #tpu.memory_space<vmem>>, %arg14: memref<4x8x16xf32, #tpu.memory_space<vmem>>) attributes {dimension_semantics = [#tpu.dimension_semantics<parallel>, #tpu.dimension_semantics<parallel>, #tpu.dimension_semantics<arbitrary>], iteration_bounds = array<i64: 2, 1, 1>, scalar_prefetch = 0 : i64, scratch_operands = 4 : i64, tpu.core_type = #tpu.core_type<tc>, window_params = [{transform_indices = @transform_0, window_bounds = array<i64: 1, 32, 16>}, {transform_indices = @transform_1, window_bounds = array<i64: 1, 4, 8, 16>}, {transform_indices = @transform_2, window_bounds = array<i64: 1, 4, 8, 16>}, {pipeline_mode = #tpu.pipeline_mode<synchronous>, transform_indices = @transform_3, window_bounds = array<i64: 32, 32>}, {pipeline_mode = #tpu.pipeline_mode<synchronous>, transform_indices = @transform_4, window_bounds = array<i64: 32, 1>}, {pipeline_mode = #tpu.pipeline_mode<synchronous>, transform_indices = @transform_5, window_bounds = array<i64: 32, 32>}, {pipeline_mode = #tpu.pipeline_mode<synchronous>, transform_indices = @transform_6, window_bounds = array<i64: 32, 1>}, {transform_indices = @transform_7, window_bounds = array<i64: 1, 32, 16>}]} {
    %c0_i32 = arith.constant 0 : i32
    %0 = arith.cmpi eq, %arg2, %c0_i32 : i32
    %1 = arith.extui %0 : i1 to i32
    %c0_i32_0 = arith.constant 0 : i32
    %2 = arith.cmpi ne, %1, %c0_i32_0 : i32
    scf.if %2 {
      %c0_30 = arith.constant 0 : index
      %c0_31 = arith.constant 0 : index
      %c0_32 = arith.constant 0 : index
      %35 = vector.load %arg3[%c0_30, %c0_31, %c0_32] : memref<1x32x16xbf16, #tpu.memory_space<vmem>>, vector<1x32x16xbf16>
      %36 = vector.shape_cast %35 : vector<1x32x16xbf16> to vector<32x16xbf16>
      %c0_33 = arith.constant 0 : index
      %c0_34 = arith.constant 0 : index
      %37 = vector.load %arg6[%c0_33, %c0_34] : memref<32x32xbf16, #tpu.memory_space<vmem>>, vector<32x32xbf16>
      %cst_35 = arith.constant dense<0.000000e+00> : vector<32x16xf32>
      %38 = tpu.matmul %37, %36, %cst_35 {dimension_numbers = #tpu.dot_dimension_numbers<[1], [0], [0], [1], [0, 0, 1, 1], [], []>} : vector<32x32xbf16>, vector<32x16xbf16>, vector<32x16xf32> -> vector<32x16xf32>
      %c0_36 = arith.constant 0 : index
      %c0_37 = arith.constant 0 : index
      %39 = vector.load %arg7[%c0_36, %c0_37] : memref<32x1xf32, #tpu.memory_space<vmem>>, vector<32x1xf32>
      %40 = vector.broadcast %39 : vector<32x1xf32> to vector<32x16xf32>
      %41 = arith.addf %38, %40 : vector<32x16xf32>
      %42 = vector.shape_cast %41 : vector<32x16xf32> to vector<4x8x16xf32>
      %43 = arith.truncf %42 : vector<4x8x16xf32> to vector<4x8x16xbf16>
      %c0_38 = arith.constant 0 : index
      %c0_39 = arith.constant 0 : index
      %c0_40 = arith.constant 0 : index
      %44 = vector.load %arg11[%c0_38, %c0_39, %c0_40] : memref<4x8x16xbf16, #tpu.memory_space<vmem>>, vector<4x8x16xbf16>
      tpu.vector_store %arg11[%c0_38, %c0_39, %c0_40], %43 {strides = array<i32>} : memref<4x8x16xbf16, #tpu.memory_space<vmem>>, vector<4x8x16xbf16>,
      %cst_41 = arith.constant 0xFF800000 : f32
      %45 = vector.broadcast %cst_41 : f32 to vector<4x16xf32>
      %c0_42 = arith.constant 0 : index
      %c0_43 = arith.constant 0 : index
      %46 = vector.load %arg12[%c0_42, %c0_43] : memref<4x16xf32, #tpu.memory_space<vmem>>, vector<4x16xf32>
      tpu.vector_store %arg12[%c0_42, %c0_43], %45 {strides = array<i32>} : memref<4x16xf32, #tpu.memory_space<vmem>>, vector<4x16xf32>,
      %cst_44 = arith.constant 0.000000e+00 : f32
      %47 = vector.broadcast %cst_44 : f32 to vector<4x16xf32>
      %c0_45 = arith.constant 0 : index
      %c0_46 = arith.constant 0 : index
      %48 = vector.load %arg13[%c0_45, %c0_46] : memref<4x16xf32, #tpu.memory_space<vmem>>, vector<4x16xf32>
      tpu.vector_store %arg13[%c0_45, %c0_46], %47 {strides = array<i32>} : memref<4x16xf32, #tpu.memory_space<vmem>>, vector<4x16xf32>,
      %cst_47 = arith.constant 0.000000e+00 : f32
      %49 = vector.broadcast %cst_47 : f32 to vector<4x8x16xf32>
      %c0_48 = arith.constant 0 : index
      %c0_49 = arith.constant 0 : index
      %c0_50 = arith.constant 0 : index
      %50 = vector.load %arg14[%c0_48, %c0_49, %c0_50] : memref<4x8x16xf32, #tpu.memory_space<vmem>>, vector<4x8x16xf32>
      tpu.vector_store %arg14[%c0_48, %c0_49, %c0_50], %49 {strides = array<i32>} : memref<4x8x16xf32, #tpu.memory_space<vmem>>, vector<4x8x16xf32>,
    } else {
    }
    %c0 = arith.constant 0 : index
    %c0_1 = arith.constant 0 : index
    %c0_2 = arith.constant 0 : index
    %c0_3 = arith.constant 0 : index
    %3 = vector.load %arg4[%c0, %c0_1, %c0_2, %c0_3] : memref<1x4x8x16xbf16, #tpu.memory_space<vmem>>, vector<1x4x8x16xbf16>
    %4 = vector.shape_cast %3 : vector<1x4x8x16xbf16> to vector<4x8x16xbf16>
    %c0_4 = arith.constant 0 : index
    %c0_5 = arith.constant 0 : index
    %c0_6 = arith.constant 0 : index
    %c0_7 = arith.constant 0 : index
    %5 = vector.load %arg5[%c0_4, %c0_5, %c0_6, %c0_7] : memref<1x4x8x16xbf16, #tpu.memory_space<vmem>>, vector<1x4x8x16xbf16>
    %6 = vector.shape_cast %5 : vector<1x4x8x16xbf16> to vector<4x8x16xbf16>
    %c0_8 = arith.constant 0 : index
    %c0_9 = arith.constant 0 : index
    %c0_10 = arith.constant 0 : index
    %7 = vector.load %arg11[%c0_8, %c0_9, %c0_10] : memref<4x8x16xbf16, #tpu.memory_space<vmem>>, vector<4x8x16xbf16>
    "tpu.trace_start"() <{level = 10 : i32, message = "hdn,hdm->hnm"}> : () -> ()
    %cst = arith.constant dense<0.000000e+00> : vector<4x16x16xf32>
    %8 = tpu.matmul %7, %4, %cst {dimension_numbers = #tpu.dot_dimension_numbers<[1], [1], [2], [2], [0, 0, 0, 2, 1, 2], [0], [0]>} : vector<4x8x16xbf16>, vector<4x8x16xbf16>, vector<4x16x16xf32> -> vector<4x16x16xf32>
    "tpu.trace_stop"() : () -> ()
    %c0_11 = arith.constant 0 : index
    %c0_12 = arith.constant 0 : index
    %9 = vector.load %arg12[%c0_11, %c0_12] : memref<4x16xf32, #tpu.memory_space<vmem>>, vector<4x16xf32>
    %cst_13 = arith.constant dense<0xFF800000> : vector<4x16xf32>
    %10 = vector.multi_reduction <maximumf>, %8, %cst_13 [2] : vector<4x16x16xf32> to vector<4x16xf32>
    %11 = arith.maximumf %9, %10 : vector<4x16xf32>
    %12 = arith.subf %9, %11 : vector<4x16xf32>
    %13 = math.exp %12 : vector<4x16xf32>
    %14 = vector.shape_cast %11 : vector<4x16xf32> to vector<4x16x1xf32>
    %15 = vector.broadcast %14 : vector<4x16x1xf32> to vector<4x16x16xf32>
    %16 = arith.subf %8, %15 : vector<4x16x16xf32>
    %17 = math.exp %16 : vector<4x16x16xf32>
    %c0_14 = arith.constant 0 : index
    %c0_15 = arith.constant 0 : index
    %18 = vector.load %arg13[%c0_14, %c0_15] : memref<4x16xf32, #tpu.memory_space<vmem>>, vector<4x16xf32>
    %19 = arith.mulf %13, %18 : vector<4x16xf32>
    %cst_16 = arith.constant dense<0.000000e+00> : vector<4x16xf32>
    %20 = vector.multi_reduction <add>, %17, %cst_16 [2] : vector<4x16x16xf32> to vector<4x16xf32>
    %21 = arith.addf %19, %20 : vector<4x16xf32>
    %c0_17 = arith.constant 0 : index
    %c0_18 = arith.constant 0 : index
    %22 = vector.load %arg13[%c0_17, %c0_18] : memref<4x16xf32, #tpu.memory_space<vmem>>, vector<4x16xf32>
    tpu.vector_store %arg13[%c0_17, %c0_18], %21 {strides = array<i32>} : memref<4x16xf32, #tpu.memory_space<vmem>>, vector<4x16xf32>,
    %23 = arith.truncf %17 : vector<4x16x16xf32> to vector<4x16x16xbf16>
    "tpu.trace_start"() <{level = 10 : i32, message = "hdm,hnm->hdn"}> : () -> ()
    %cst_19 = arith.constant dense<0.000000e+00> : vector<4x8x16xf32>
    %24 = tpu.matmul %6, %23, %cst_19 {dimension_numbers = #tpu.dot_dimension_numbers<[2], [2], [1], [1], [0, 0, 0, 1, 1, 1], [0], [0]>} : vector<4x8x16xbf16>, vector<4x16x16xbf16>, vector<4x8x16xf32> -> vector<4x8x16xf32>
    "tpu.trace_stop"() : () -> ()
    %25 = vector.shape_cast %13 : vector<4x16xf32> to vector<4x1x16xf32>
    %c0_20 = arith.constant 0 : index
    %c0_21 = arith.constant 0 : index
    %c0_22 = arith.constant 0 : index
    %26 = vector.load %arg14[%c0_20, %c0_21, %c0_22] : memref<4x8x16xf32, #tpu.memory_space<vmem>>, vector<4x8x16xf32>
    %27 = vector.broadcast %25 : vector<4x1x16xf32> to vector<4x8x16xf32>
    %28 = arith.mulf %27, %26 : vector<4x8x16xf32>
    %29 = arith.addf %28, %24 : vector<4x8x16xf32>
    %c0_23 = arith.constant 0 : index
    %c0_24 = arith.constant 0 : index
    %c0_25 = arith.constant 0 : index
    %30 = vector.load %arg14[%c0_23, %c0_24, %c0_25] : memref<4x8x16xf32, #tpu.memory_space<vmem>>, vector<4x8x16xf32>
    tpu.vector_store %arg14[%c0_23, %c0_24, %c0_25], %29 {strides = array<i32>} : memref<4x8x16xf32, #tpu.memory_space<vmem>>, vector<4x8x16xf32>,
    %c0_26 = arith.constant 0 : index
    %c0_27 = arith.constant 0 : index
    %31 = vector.load %arg12[%c0_26, %c0_27] : memref<4x16xf32, #tpu.memory_space<vmem>>, vector<4x16xf32>
    tpu.vector_store %arg12[%c0_26, %c0_27], %11 {strides = array<i32>} : memref<4x16xf32, #tpu.memory_space<vmem>>, vector<4x16xf32>,
    %c0_i32_28 = arith.constant 0 : i32
    %32 = arith.cmpi eq, %arg2, %c0_i32_28 : i32
    %33 = arith.extui %32 : i1 to i32
    %c0_i32_29 = arith.constant 0 : i32
    %34 = arith.cmpi ne, %33, %c0_i32_29 : i32
    scf.if %34 {
      %c0_30 = arith.constant 0 : index
      %c0_31 = arith.constant 0 : index
      %35 = vector.load %arg13[%c0_30, %c0_31] : memref<4x16xf32, #tpu.memory_space<vmem>>, vector<4x16xf32>
      %36 = tpu.reciprocal %35 {approx = true} : vector<4x16xf32> -> vector<4x16xf32>
      %c0_32 = arith.constant 0 : index
      %c0_33 = arith.constant 0 : index
      %c0_34 = arith.constant 0 : index
      %37 = vector.load %arg14[%c0_32, %c0_33, %c0_34] : memref<4x8x16xf32, #tpu.memory_space<vmem>>, vector<4x8x16xf32>
      %38 = vector.shape_cast %36 : vector<4x16xf32> to vector<4x1x16xf32>
      %39 = vector.broadcast %38 : vector<4x1x16xf32> to vector<4x8x16xf32>
      %40 = arith.mulf %37, %39 : vector<4x8x16xf32>
      %41 = vector.shape_cast %40 : vector<4x8x16xf32> to vector<32x16xf32>
      %c0_35 = arith.constant 0 : index
      %c0_36 = arith.constant 0 : index
      %42 = vector.load %arg8[%c0_35, %c0_36] : memref<32x32xbf16, #tpu.memory_space<vmem>>, vector<32x32xbf16>
      %43 = arith.truncf %41 : vector<32x16xf32> to vector<32x16xbf16>
      %cst_37 = arith.constant dense<0.000000e+00> : vector<32x16xf32>
      %44 = tpu.matmul %42, %43, %cst_37 {dimension_numbers = #tpu.dot_dimension_numbers<[1], [0], [0], [1], [0, 0, 1, 1], [], []>} : vector<32x32xbf16>, vector<32x16xbf16>, vector<32x16xf32> -> vector<32x16xf32>
      %c0_38 = arith.constant 0 : index
      %c0_39 = arith.constant 0 : index
      %45 = vector.load %arg9[%c0_38, %c0_39] : memref<32x1xf32, #tpu.memory_space<vmem>>, vector<32x1xf32>
      %46 = vector.broadcast %45 : vector<32x1xf32> to vector<32x16xf32>
      %47 = arith.addf %44, %46 : vector<32x16xf32>
      %c0_40 = arith.constant 0 : index
      %c0_41 = arith.constant 0 : index
      %c0_42 = arith.constant 0 : index
      %48 = vector.load %arg10[%c0_40, %c0_41, %c0_42] : memref<1x32x16xf32, #tpu.memory_space<vmem>>, vector<1x32x16xf32>
      %49 = vector.shape_cast %48 : vector<1x32x16xf32> to vector<32x16xf32>
      %50 = vector.shape_cast %47 : vector<32x16xf32> to vector<1x32x16xf32>
      tpu.vector_store %arg10[%c0_40, %c0_41, %c0_42], %50 {strides = array<i32>} : memref<1x32x16xf32, #tpu.memory_space<vmem>>, vector<1x32x16xf32>,
    } else {
    }
    return
  }
  func.func @transform_0(%arg0: i32, %arg1: i32, %arg2: i32) -> (i32, i32, i32) {
    %c0_i32 = arith.constant 0 : i32
    %c0_i32_0 = arith.constant 0 : i32
    return %arg0, %c0_i32, %arg1 : i32, i32, i32
  }
  func.func @transform_1(%arg0: i32, %arg1: i32, %arg2: i32) -> (i32, i32, i32, i32) {
    %c0_i32 = arith.constant 0 : i32
    %c0_i32_0 = arith.constant 0 : i32
    %c0_i32_1 = arith.constant 0 : i32
    return %arg0, %c0_i32, %c0_i32_0, %arg2 : i32, i32, i32, i32
  }
  func.func @transform_2(%arg0: i32, %arg1: i32, %arg2: i32) -> (i32, i32, i32, i32) {
    %c0_i32 = arith.constant 0 : i32
    %c0_i32_0 = arith.constant 0 : i32
    %c0_i32_1 = arith.constant 0 : i32
    return %arg0, %c0_i32, %c0_i32_0, %arg2 : i32, i32, i32, i32
  }
  func.func @transform_3(%arg0: i32, %arg1: i32, %arg2: i32) -> (i32, i32) {
    %c0_i32 = arith.constant 0 : i32
    %c0_i32_0 = arith.constant 0 : i32
    %c0_i32_1 = arith.constant 0 : i32
    return %c0_i32, %c0_i32_0 : i32, i32
  }
  func.func @transform_4(%arg0: i32, %arg1: i32, %arg2: i32) -> (i32, i32) {
    %c0_i32 = arith.constant 0 : i32
    %c0_i32_0 = arith.constant 0 : i32
    %c0_i32_1 = arith.constant 0 : i32
    return %c0_i32, %c0_i32_0 : i32, i32
  }
  func.func @transform_5(%arg0: i32, %arg1: i32, %arg2: i32) -> (i32, i32) {
    %c0_i32 = arith.constant 0 : i32
    %c0_i32_0 = arith.constant 0 : i32
    %c0_i32_1 = arith.constant 0 : i32
    return %c0_i32, %c0_i32_0 : i32, i32
  }
  func.func @transform_6(%arg0: i32, %arg1: i32, %arg2: i32) -> (i32, i32) {
    %c0_i32 = arith.constant 0 : i32
    %c0_i32_0 = arith.constant 0 : i32
    %c0_i32_1 = arith.constant 0 : i32
    return %c0_i32, %c0_i32_0 : i32, i32
  }
  func.func @transform_7(%arg0: i32, %arg1: i32, %arg2: i32) -> (i32, i32, i32) {
    %c0_i32 = arith.constant 0 : i32
    %c0_i32_0 = arith.constant 0 : i32
    return %arg0, %c0_i32, %arg1 : i32, i32, i32
  }
}

</mosaic_0001>

<bundles_post_ra>
// kernel: tpu_custom_call.1
= control target key start
LH: loop header
LB: loop body
LE: loop exit
PB: predicated region body
PF: predicated region fallthrough
CT: control target
= control target key end

     0   :  { %s1787_s24 = smov 0   ;;  %s1789_s25 = smov 0   ;;  %s2069_s0 = inlined_call_operand.vmem [shape: bf16[2,32,16], index: 0, kind: input, shape index: {}]   ;;  %s2070_s1 = inlined_call_operand.vmem [shape: bf16[2,4,8,16], index: 1, kind: input, shape index: {}]   ;;  %s2071_s2 = inlined_call_operand.vmem [shape: bf16[2,4,8,16], index: 2, kind: input, shape index: {}]   ;;  %s2072_s3 = inlined_call_operand.vmem [shape: bf16[32,32], index: 3, kind: input, shape index: {}]   ;;  %s2073_s4 = inlined_call_operand.vmem [shape: f32[32,1], index: 4, kind: input, shape index: {}]   ;;  %s2074_s5 = inlined_call_operand.vmem [shape: bf16[32,32], index: 5, kind: input, shape index: {}]   ;;  %s2075_s6 = inlined_call_operand.vmem [shape: f32[32,1], index: 6, kind: input, shape index: {}]   ;;  %s2076_s7 = inlined_call_operand.vmem [shape: f32[2,32,16], index: 7, kind: output, shape index: {}]  }
   0x1   :  { %s1791_s26 = smov 0  }
   0x2 LB: > { %s36_s27 = sadd.s32 1, %s1736_s25  ;;  %p1540_p0 = scmp.ge.s32.totalorder %s1740_s26, 1  ;;  %s1740_s26 = sphi %s1791_s26, %s17_s26   ;;  %s1736_s25 = sphi %s1789_s25, %s2078_s25   ;;  %s1732_s24 = sphi %s1787_s24, %s2077_s24  }
   0x3   : > { %p38_p1 = scmp.ge.s32.totalorder %s36_s27, 2  ;;  %p293_p2 = scmp.lt.s32.totalorder %s1740_s26, 3 }
   0x5   : > { %s2080_s27 = smov (%p38_p1, %s36_s27), 0  ;;  %p294_p3 = pnand %p1540_p0, %p293_p2 }
   0x6   : > { %p347_p4 = scmp.lt.s32.totalorder (!%p294_p3), %s1732_s24, 1  ;;  %v1694_v0 = vld [vmem:[%s2072_s3] sm:$0xff] (!%p294_p3)   ;;  %vm438_vm0 = vcmask (!%p294_p3), 261120   ;;  %v394_v2 = vld [vmem:[%s2073_s4 + $0x10] sm:$0xff] (!%p294_p3)  ;;  %v1742_v3 = vmov (!%p294_p3), 0   ;;  %v393_v4 = vld [vmem:[%s2073_s4 + $0x8] sm:$0xff] (!%p294_p3) }
   0x7   : > { %297 = sbr.rel (%p294_p3) target bundleno = 1340 (0x53c), region = 48  ;;  %1601 = vmatprep.mubr.msk.bf16.mxu0 (!%p294_p3), %vm438_vm0, %v1694_v0  ;;  %v392_v1 = vld [vmem:[%s2073_s4] sm:$0xff] (!%p294_p3)  ;;  %1690 = vset.pattern.permute.xlu0 (!%p294_p3), %v1742_v3  ;;  %v395_v5 = vld [vmem:[%s2073_s4 + $0x18] sm:$0xff] (!%p294_p3)  ;;  %v1695_v8 = vld [vmem:[%s2072_s3 + $0x8] sm:$0xff] (!%p294_p3)   ;;  %vm498_vm1 = vcmask (!%p294_p3), 125952   ;;  %vm542_vm2 = vcmask (!%p294_p3), 1043456  }
   0x8   : > { %1691 = vset.pattern.permute.xlu1 (!%p294_p3), %v1742_v3  ;;  %398 = vperm.xlu0 (!%p294_p3), %1690, %v392_v1   ;;  %v1743_v9 = vmov (!%p294_p3), 0.0   ;;  %vm1744_vm3 = vmmov (!%p294_p3), 0   ;;  %vm538_vm4 = vcmask (!%p294_p3), 64512   ;;  %vm505_vm5 = vcmask (!%p294_p3), 130048  }
   0x9   : > { %408 = vperm.xlu1 (!%p294_p3), %1691, %v394_v2   ;;  %1605 = vmatprep.subr.bf16.mxu1 (!%p294_p3), %v1743_v9  ;;  %504 = vst.msk [vmem:[#allocation4] sm:$0xf] (!%p294_p3), %vm498_vm1, %v1743_v9  ;;  %v1745_v2 = vmov (!%p294_p3), -inf   ;;  %v810_v3 = vlaneseq (!%p294_p3)  ;;  %vm850_vm6 = vcmask (!%p294_p3), 1041409   ;;  %vm821_vm7 = vcmask (!%p294_p3), 130112  }
   0xa   : > { %1607 = vmatprep.mubr.msk.bf16.mxu1 (!%p294_p3), %vm1744_vm3, %v1743_v9  ;;  %506 = vst.msk [vmem:[#allocation5] sm:$0xff] (!%p294_p3), %vm505_vm5, %v1743_v9  ;;  %507 = vst.msk [vmem:[#allocation5 + $0x8] sm:$0xff] (!%p294_p3), %vm505_vm5, %v1743_v9  ;;  %vm852_vm8 = vcmask (!%p294_p3), 1042434   ;;  %vm854_vm9 = vcmask (!%p294_p3), 1043459  }
   0xb   : > { %508 = vst.msk [vmem:[#allocation5 + $0x10] sm:$0xff] (!%p294_p3), %vm505_vm5, %v1743_v9  ;;  %509 = vst.msk [vmem:[#allocation5 + $0x18] sm:$0xff] (!%p294_p3), %vm505_vm5, %v1743_v9 }
   0xc   : > { %403 = vperm.xlu0 (!%p294_p3), %1690, %v393_v4   ;;  %503 = vst.msk [vmem:[#allocation3] sm:$0xf] (!%p294_p3), %vm498_vm1, %v1745_v2  ;;  %v811_v4 = vand.u32 (!%p294_p3), 127, %v810_v3 }
   0xd   : > { %413 = vperm.xlu1 (!%p294_p3), %1691, %v395_v5  }
   0xe   : > { %s2082_s24 = smov (!%p347_p4, %s1732_s24), 1 }
   0xf   : > { %s1818_s11 = sshll.u32 %s2082_s24, 4  ;;  %s1572_s20 = sshll.u32 %s2082_s24, 5 }
  0x10   : > { %s354_s14 = scalar_lea.vmem %s2069_s0, %s1818_s11  ;;  %s1838_s23 = scalar_lea.vmem %s2070_s1, %s1818_s11 }
  0x11   : > { %v1692_v6 = vld [vmem:[%s354_s14] sm:$0xff]   ;;  %v1693_v7 = vld [vmem:[%s354_s14 + $0x8] sm:$0xff]   ;;  %s1977_s30 = scalar_lea.vmem %s2071_s2, %s1818_s11 }
  0x12   : > { %1597 = vmatprep.subr.bf16.mxu0 %v1692_v6  ;;  %v510_v10 = vld [vmem:[%s1838_s23] sm:$0xf]  ;;  %v512_v11 = vld [vmem:[%s1838_s23 + $0x8] sm:$0xf]  ;;  %v511_v34 = vld [vmem:[%s1838_s23 + $0x4] sm:$0xf] }
  0x13   : > { %1598 = vmatpush3.bf16.msra.mxu0 %v1692_v6  ;;  %v544_v12 = vsel %vm542_vm2, %v510_v10, 0  ;;  %v670_v13 = vsel %vm542_vm2, %v512_v11, 0  ;;  %v607_v35 = vsel %vm542_vm2, %v511_v34, 0  ;;  %v513_v38 = vld [vmem:[%s1838_s23 + $0xc] sm:$0xf]  ;;  %v1917_v10 = vshrl.u32 %v810_v3, 7  ;;  %s378_s23 = scalar_lea.vmem %s2076_s7, %s1572_s20 }
  0x14   : > { %1599 = vmatprep.subr.bf16.mxu0 %v1693_v7  ;;  %1606 = vmatpush3.bf16.msra.mxu1 %v544_v12  ;;  %v733_v40 = vsel %vm542_vm2, %v513_v38, 0 }
  0x15   : > { %1611 = vmatprep.subr.bf16.mxu1 %v1743_v9  ;;  %v885_v38 = vsub.s32 2, %v1917_v10 }
  0x17   : > { %1600 = vmatpush3.bf16.msra.mxu0 %v1693_v7  ;;  %v816_v7 = vadd.s32 4294967288, %v811_v4 }
  0x18   : > { %1617 = vmatprep.subr.bf16.mxu0 %v1743_v9 }
  0x19   : > { %v1920_v12 = vsub.s32 %v816_v7, %v1917_v10 }
  0x1a   : > { %1602 = vmatmul.mubr.msk.bf16.vlgmr.msra.gmra.mrb[0].mxu0 %vm438_vm0, %v1695_v8 }
  0x1b   : > { %1619 = vmatprep.mubr.msk.bf16.mxu0 %vm1744_vm3, %v1743_v9  ;;  %1618 = vmatpush3.bf16.msra.mxu0 %v670_v13 }
  0x1c   : > { %1629 = vmatprep.subr.bf16.mxu0 %v1743_v9 }
  0x87   : > { %v399_v15 = vpop.permute.xlu0 %398 }
  0x88   : > { %v409_v14 = vpop.permute.xlu1 %408 }
  0x8b   : > { %v404_v23 = vpop.permute.xlu0 %403 }
  0x8c   : > { %v414_v17 = vpop.permute.xlu1 %413 }
  0xed   : > { %v1603_v16 = vpop.f32.mrb[0].mxu0 }
  0xee   : > { %v488_v18 = vadd.f32 %v1603_v16, %v409_v14  ;;  %v479_v19 = vpop.f32.mrb[1].mxu0  ;;  %v1923_v14 = vsub.s32 %v811_v4, %v1917_v10 }
  0xef   : > { %v480_v20 = vadd.f32 %v479_v19, %v399_v15  ;;  %v1604_v21 = vpop.f32.mrb[2].mxu0 }
  0xf0   : > { %v496_v22 = vpack.c.bf16 %v488_v18, %v488_v18  ;;  %v491_v24 = vadd.f32 %v1604_v21, %v414_v17  ;;  %v482_v25 = vpop.f32.mrb[3].mxu0 }
  0xf1   : > { %v494_v26 = vpack.c.bf16 %v480_v20, %v480_v20  ;;  %v483_v27 = vadd.f32 %v482_v25, %v404_v23 }
  0xf2   : > { %501 = vst.msk [vmem:[#allocation2 + $0x8] sm:$0xf] %vm498_vm1, %v496_v22  ;;  %v497_v28 = vpack.c.bf16 %v491_v24, %v491_v24 }
  0xf3   : > { %499 = vst.msk [vmem:[#allocation2] sm:$0xf] %vm498_vm1, %v494_v26  ;;  %v495_v29 = vpack.c.bf16 %v483_v27, %v483_v27 }
  0xf4   : > { %502 = vst.msk [vmem:[#allocation2 + $0xc] sm:$0xf] %vm498_vm1, %v497_v28 }
  0xf5   : > { %500 = vst.msk [vmem:[#allocation2 + $0x4] sm:$0xf] %vm498_vm1, %v495_v29 }
  0xf9   : > { %v520_v32 = vld [vmem:[#allocation2 + $0x8] sm:$0xf] }
  0xfa   : > { %v518_v30 = vld [vmem:[#allocation2] sm:$0xf] }
  0xfb   : > { %522 = vxpose.xlu0.c.b16.start.end [1/1] (short) (narrow) %v518_v30, 16  ;;  %v521_v33 = vld [vmem:[#allocation2 + $0xc] sm:$0xf]  ;;  %v1937_v30 = vld [vmem:[#allocation3] sm:$0xf] }
  0xfc   : > { %v519_v31 = vld [vmem:[#allocation2 + $0x4] sm:$0xf] }
  0xfd   : > { %587 = vxpose.xlu1.c.b16.start.end [1/1] (short) (narrow) %v519_v31, 16 }
  0xff   : > { %650 = vxpose.xlu0.c.b16.start.end [1/1] (short) (narrow) %v520_v32, 16 }
 0x103   : > { %713 = vxpose.xlu0.c.b16.start.end [1/1] (short) (narrow) %v521_v33, 16  ;;  %v1942_v33 = vsub.s32 0, %v1917_v10 }
 0x161   : > { %v530_v36 = vpop.trf.xlu0 }
 0x162   : > { %1608 = vmatmul.mubr.msk.bf16.vlgmr.msra.gmra.mrb[0].mxu1 %vm538_vm4, %v530_v36 }
 0x163   : > { %1612 = vmatpush3.bf16.msra.mxu1 %v607_v35  ;;  %1613 = vmatprep.mubr.msk.bf16.mxu1 %vm1744_vm3, %v1743_v9  ;;  %v595_v39 = vpop.trf.xlu1 }
 0x164   : > { %1623 = vmatprep.subr.bf16.mxu1 %v1743_v9 }
 0x165   : > { %v658_v37 = vpop.trf.xlu0 }
 0x166   : > { %1620 = vmatmul.mubr.msk.bf16.vlgmr.msra.gmra.mrb[4].mxu0 %vm538_vm4, %v658_v37 }
 0x167   : > { %1631 = vmatprep.mubr.msk.bf16.mxu0 %vm1744_vm3, %v1743_v9 }
 0x169   : > { %v721_v41 = vpop.trf.xlu0 }
 0x16a   : > { %1614 = vmatmul.mubr.msk.bf16.vlgmr.msra.gmra.mrb[4].mxu1 %vm538_vm4, %v595_v39  ;;  %v874_v39 = vsub.s32 1, %v1917_v10 }
 0x16b   : > { %1624 = vmatpush3.bf16.msra.mxu1 %v733_v40  ;;  %1625 = vmatprep.mubr.msk.bf16.mxu1 %vm1744_vm3, %v1743_v9 }
 0x16c   : > { %1635 = vmatprep.subr.bf16.mxu1 %v1743_v9 }
 0x172   : > { %1626 = vmatmul.mubr.msk.bf16.vlgmr.msra.gmra.mrb[8].mxu1 %vm538_vm4, %v721_v41 }
 0x173   : > { %1637 = vmatprep.mubr.msk.bf16.mxu1 %vm1744_vm3, %v1743_v9 }
 0x235   : > { %v1884_v42 = vpop.f32.mrb[0].mxu1 }
 0x236   : > { %v1609_v43 = vpop.f32.mrb[1].mxu1  ;;  %v778_v54 = vsel %vm505_vm5, %v1884_v42, -inf }
 0x237   : > { %v1886_v44 = vpop.f32.mrb[2].mxu1  ;;  %v896_v43 = vsub.s32 3, %v1917_v10 }
 0x238   : > { %v1610_v45 = vpop.f32.mrb[3].mxu1  ;;  %v781_v57 = vsel %vm505_vm5, %v1886_v44, -inf }
 0x239   : > { %v1888_v46 = vpop.f32.mrb[4].mxu0 }
 0x23a   : > { %v1621_v47 = vpop.f32.mrb[5].mxu0  ;;  %v790_v48 = vsel %vm505_vm5, %v1888_v46, -inf }
 0x23b   : > { %791 = vmax.xlane.f32.xlu1 %v790_v48  ;;  %v1892_v49 = vpop.f32.mrb[6].mxu0 }
 0x23c   : > { %v1622_v50 = vpop.f32.mrb[7].mxu0  ;;  %v793_v51 = vsel %vm505_vm5, %v1892_v49, -inf }
 0x23d   : > { %v1896_v52 = vpop.f32.mrb[4].mxu1  ;;  %794 = vmax.xlane.f32.xlu0 %v793_v51 }
 0x23e   : > { %v1615_v53 = vpop.f32.mrb[5].mxu1  ;;  %v784_v58 = vsel %vm505_vm5, %v1896_v52, -inf }
 0x23f   : > { %v1900_v55 = vpop.f32.mrb[6].mxu1  ;;  %779 = vmax.xlane.f32.xlu1 %v778_v54 }
 0x240   : > { %v1616_v56 = vpop.f32.mrb[7].mxu1  ;;  %v787_v59 = vsel %vm505_vm5, %v1900_v55, -inf }
 0x241   : > { %782 = vmax.xlane.f32.xlu0 %v781_v57 }
 0x243   : > { %785 = vmax.xlane.f32.xlu1 %v784_v58 }
 0x245   : > { %788 = vmax.xlane.f32.xlu0 %v787_v59  ;;  %v1908_v60 = vpop.f32.mrb[8].mxu1 }
 0x246   : > { %v1627_v61 = vpop.f32.mrb[9].mxu1  ;;  %v796_v62 = vsel %vm505_vm5, %v1908_v60, -inf }
 0x247   : > { %797 = vmax.xlane.f32.xlu1 %v796_v62  ;;  %v1912_v63 = vpop.f32.mrb[10].mxu1 }
 0x248   : > { %v1628_v0 = vpop.f32.mrb[11].mxu1  ;;  %v799_v1 = vsel %vm505_vm5, %v1912_v63, -inf }
 0x249   : > { %800 = vmax.xlane.f32.xlu0 %v799_v1 }
 0x2c8   : > { %v792_v5 = vpop.xlane.xlu1 %791 }
 0x2c9   : > { %v835_v24 = vrot.slane %v792_v5, %v1923_v14 }
 0x2ca   : > { %v795_v6 = vpop.xlane.xlu0 %794 }
 0x2cb   : > { %v839_v20 = vrot.slane %v795_v6, %v1920_v12 }
 0x2cc   : > { %v780_v8 = vpop.xlane.xlu1 %779 }
 0x2cd   : > { %v815_v17 = vrot.slane %v780_v8, %v1923_v14  ;;  %v840_v29 = vsel %vm821_vm7, %v839_v20, %v835_v24 }
 0x2ce   : > { %v783_v11 = vpop.xlane.xlu0 %782 }
 0x2cf   : > { %v820_v15 = vrot.slane %v783_v11, %v1920_v12 }
 0x2d0   : > { %v786_v13 = vpop.xlane.xlu1 %785 }
 0x2d1   : > { %v826_v18 = vrot.slane %v786_v13, %v1923_v14  ;;  %v822_v22 = vsel %vm821_vm7, %v820_v15, %v815_v17 }
 0x2d2   : > { %v789_v16 = vpop.xlane.xlu0 %788 }
 0x2d3   : > { %v830_v19 = vrot.slane %v789_v16, %v1920_v12 }
 0x2d4   : > { %v798_v21 = vpop.xlane.xlu1 %797 }
 0x2d5   : > { %v831_v23 = vsel %vm821_vm7, %v830_v19, %v826_v18  ;;  %v844_v27 = vrot.slane %v798_v21, %v1923_v14  ;;  %v514_v21 = vld [vmem:[%s1977_s30] sm:$0xf] }
 0x2d6   : > { %v851_v25 = vsel %vm850_vm6, %v831_v23, %v822_v22  ;;  %v801_v26 = vpop.xlane.xlu0 %800 }
 0x2d7   : > { %v848_v28 = vrot.slane %v801_v26, %v1920_v12  ;;  %v853_v31 = vsel %vm852_vm8, %v840_v29, %v851_v25 }
 0x2d9   : > { %v849_v32 = vsel %vm821_vm7, %v848_v28, %v844_v27 }
 0x2da   : > { %v855_v34 = vsel %vm854_vm9, %v849_v32, %v853_v31  ;;  %v515_v32 = vld [vmem:[%s1977_s30 + $0x4] sm:$0xf] }
 0x2db   : > { %v1946_v35 = vmax.f32 %v1937_v30, %v855_v34 }
 0x2dd   : > { %v858_v36 = vsub.f32 %v1937_v30, %v1946_v35  ;;  %1255 = vst.msk [vmem:[#allocation3] sm:$0xf] %vm498_vm1, %v1946_v35  ;;  %v864_v37 = vrot.slane %v1946_v35, %v1942_v33  ;;  %v886_v40 = vrot.slane %v1946_v35, %v885_v38  ;;  %v875_v41 = vrot.slane %v1946_v35, %v874_v39  ;;  %v516_v38 = vld [vmem:[%s1977_s30 + $0x8] sm:$0xf]  ;;  %v1320_v39 = vld [vmem:[%s2075_s6] sm:$0xff] }
 0x2de   : > { %v897_v45 = vrot.slane %v1946_v35, %v896_v43  ;;  %v1323_v43 = vld [vmem:[%s2075_s6 + $0x18] sm:$0xff] }
 0x2df   : > { %870 = vbcast.lane.b32.xlu0 %v864_v37, 264  ;;  %866 = vbcast.lane.b32.xlu1 %v864_v37, 256 }
 0x2e3   : > { %888 = vbcast.lane.b32.xlu0 %v886_v40, 256  ;;  %877 = vbcast.lane.b32.xlu1 %v875_v41, 256 }
 0x2e7   : > { %899 = vbcast.lane.b32.xlu0 %v897_v45, 256  ;;  %881 = vbcast.lane.b32.xlu1 %v875_v41, 264  ;;  %v1322_v41 = vld [vmem:[%s2075_s6 + $0x10] sm:$0xff] }
 0x2eb   : > { %892 = vbcast.lane.b32.xlu1 %v886_v40, 264  ;;  %v517_v40 = vld [vmem:[%s1977_s30 + $0xc] sm:$0xf] }
 0x2ef   : > { %903 = vbcast.lane.b32.xlu1 %v897_v45, 264  ;;  %v1696_v45 = vld [vmem:[%s2074_s5] sm:$0xff]  }
 0x351   : > { %v871_v47 = vpop.permute.xlu0 %870  ;;  %v867_v48 = vpop.permute.xlu1 %866 }
 0x352   : > { %v906_v50 = vsub.f32 %v1886_v44, %v871_v47  ;;  %v905_v51 = vsub.f32 %v1884_v42, %v867_v48  ;;  %v859_v48 = vmul.f32 1.442695, %v858_v36 }
 0x354   : > { %v915_v53 = vmul.f32 1.442695, %v906_v50  ;;  %v913_v54 = vmul.f32 1.442695, %v905_v51 }
 0x355   : > { %v889_v56 = vpop.permute.xlu0 %888  ;;  %v878_v57 = vpop.permute.xlu1 %877 }
 0x356   : > { %1698 = vpow2.f32 %v915_v53  ;;  %v909_v58 = vsub.f32 %v1888_v46, %v889_v56  ;;  %v907_v59 = vsub.f32 %v1896_v52, %v878_v57 }
 0x357   : > { %1700 = vpow2.f32 %v913_v54 }
 0x358   : > { %v921_v61 = vmul.f32 1.442695, %v909_v58  ;;  %v917_v62 = vmul.f32 1.442695, %v907_v59 }
 0x359   : > { %v900_v0 = vpop.permute.xlu0 %899  ;;  %v882_v1 = vpop.permute.xlu1 %881 }
 0x35a   : > { %1702 = vpow2.f32 %v921_v61  ;;  %v911_v2 = vsub.f32 %v1908_v60, %v900_v0  ;;  %v908_v44 = vsub.f32 %v1900_v55, %v882_v1 }
 0x35b   : > { %1704 = vpow2.f32 %v917_v62 }
 0x35c   : > { %v925_v42 = vmul.f32 1.442695, %v911_v2  ;;  %v919_v3 = vmul.f32 1.442695, %v908_v44  ;;  %v929_v2 = vld [vmem:[#allocation4] sm:$0xf] }
 0x35d   : > { %v893_v4 = vpop.permute.xlu1 %892 }
 0x35e   : > { %1706 = vpow2.f32 %v925_v42  ;;  %v910_v5 = vsub.f32 %v1892_v49, %v893_v4 }
 0x35f   : > { %1708 = vpow2.f32 %v919_v3 }
 0x360   : > { %v1699_v46 = vpop.eup %1698  ;;  %v923_v52 = vmul.f32 1.442695, %v910_v5 }
 0x361   : > { %v1701_v6 = vpop.eup %1700  ;;  %v904_v7 = vpop.permute.xlu1 %903  ;;  %v934_v8 = vsel %vm505_vm5, %v1699_v46, 0.0 }
 0x362   : > { %1710 = vpow2.f32 %v923_v52  ;;  %v912_v60 = vsub.f32 %v1912_v63, %v904_v7  ;;  %935 = vadd.xlane.f32.xlu1 %v934_v8  ;;  %v931_v55 = vsel %vm505_vm5, %v1701_v6, 0.0  ;;  %v1006_v11 = vpack.c.bf16 %v1699_v46, %v1701_v6 }
 0x363   : > { %932 = vadd.xlane.f32.xlu0 %v931_v55 }
 0x364   : > { %v1703_v13 = vpop.eup %1702  ;;  %v927_v15 = vmul.f32 1.442695, %v912_v60  ;;  %v1014_v49 = vsel %vm505_vm5, %v1006_v11, 0  ;;  %v1746_v60 = vmov 1966171168  }
 0x365   : > { %v1705_v16 = vpop.eup %1704  ;;  %1630 = vmatpush3.bf16.xpose.msra.mxu0 %v1014_v49  ;;  %v943_v17 = vsel %vm505_vm5, %v1703_v13, 0.0  ;;  %v1196_v55 = vunpack.c.l.s4 %v1746_v60 }
 0x366   : > { %1712 = vpow2.f32 %v927_v15  ;;  %944 = vadd.xlane.f32.xlu1 %v943_v17  ;;  %v937_v18 = vsel %vm505_vm5, %v1705_v16, 0.0  ;;  %1641 = vmatprep.subr.bf16.mxu0 %v1743_v9  ;;  %v1219_v17 = vld [vmem:[#allocation5] sm:$0xff] }
 0x367   : > { %938 = vadd.xlane.f32.xlu0 %v937_v18  ;;  %1714 = vpow2.f32 %v859_v48  ;;  %v1197_v11 = vunpack.c.0.s8 %v1196_v55  ;;  %v1697_v55 = vld [vmem:[%s2074_s5 + $0x8] sm:$0xff]  }
 0x368   : > { %v1707_v63 = vpop.eup %1706 }
 0x369   : > { %v1709_v19 = vpop.eup %1708  ;;  %v949_v20 = vsel %vm505_vm5, %v1707_v63, 0.0 }
 0x36a   : > { %950 = vadd.xlane.f32.xlu1 %v949_v20  ;;  %v940_v22 = vsel %vm505_vm5, %v1709_v19, 0.0  ;;  %v1007_v23 = vpack.c.bf16 %v1709_v19, %v1705_v16 }
 0x36b   : > { %941 = vadd.xlane.f32.xlu0 %v940_v22 }
 0x36c   : > { %v1711_v24 = vpop.eup %1710  ;;  %1632 = vmatmul.mubr.msk.bf16.vlgmr.msra.gmra.mrb[8].mxu0 %vm505_vm5, %v514_v21  ;;  %v1060_v25 = vsel %vm505_vm5, %v1007_v23, 0 }
 0x36d   : > { %1636 = vmatpush3.bf16.xpose.msra.mxu1 %v1060_v25  ;;  %v946_v26 = vsel %vm505_vm5, %v1711_v24, 0.0  ;;  %v1008_v27 = vpack.c.bf16 %v1711_v24, %v1703_v13  ;;  %1643 = vmatprep.mubr.msk.bf16.mxu0 %vm1744_vm3, %v1743_v9  ;;  %v1200_v13 = vsub.s32 %v1197_v11, %v1917_v10 }
 0x36e   : > { %1647 = vmatprep.subr.bf16.mxu1 %v1743_v9 }
 0x36f   : > { %947 = vadd.xlane.f32.xlu0 %v946_v26  ;;  %v1106_v28 = vsel %vm505_vm5, %v1008_v27, 0  ;;  %v1220_v26 = vld [vmem:[#allocation5 + $0x8] sm:$0xff] }
 0x370   : > { %v1713_v29 = vpop.eup %1712  ;;  %1642 = vmatpush3.bf16.xpose.msra.mxu0 %v1106_v28 }
 0x371   : > { %v952_v31 = vsel %vm505_vm5, %v1713_v29, 0.0  ;;  %v1009_v34 = vpack.c.bf16 %v1713_v29, %v1707_v63  ;;  %v1715_v36 = vpop.eup %1714 }
 0x372   : > { %v930_v52 = vmul.f32 %v1715_v36, %v929_v2 }
 0x373   : > { %953 = vadd.xlane.f32.xlu0 %v952_v31  ;;  %v1152_v37 = vsel %vm505_vm5, %v1009_v34, 0  ;;  %v1221_v31 = vld [vmem:[#allocation5 + $0x10] sm:$0xff] }
 0x374   : > { %1638 = vmatmul.mubr.msk.bf16.vlgmr.msra.gmra.mrb[12].mxu1 %vm505_vm5, %v515_v32 }
 0x375   : > { %1648 = vmatpush3.bf16.xpose.msra.mxu1 %v1152_v37  ;;  %1649 = vmatprep.mubr.msk.bf16.mxu1 %vm1744_vm3, %v1743_v9  ;;  %v1321_v9 = vld [vmem:[%s2075_s6 + $0x8] sm:$0xff] }
 0x377   : > { %1644 = vmatmul.mubr.msk.bf16.vlgmr.msra.gmra.mrb[12].mxu0 %vm505_vm5, %v516_v38 }
 0x378   : > { %1657 = vmatprep.mubr.msk.bf16.mxu0 %vm438_vm0, %v1696_v45 }
 0x37b   : > { %1326 = vperm.xlu1 %1691, %v1320_v39  }
 0x37c   : > { %1650 = vmatmul.mubr.msk.bf16.vlgmr.msra.gmra.mrb[16].mxu1 %vm505_vm5, %v517_v40 }
 0x37f   : > { %1336 = vperm.xlu1 %1691, %v1322_v41  }
 0x383   : > { %1341 = vperm.xlu1 %1691, %v1323_v43  }
 0x389   : > { %1331 = vperm.xlu0 %1690, %v1321_v9  }
 0x3ef   : > { %v936_v50 = vpop.xlane.xlu1 %935 }
 0x3f0   : > { %v933_v47 = vpop.xlane.xlu0 %932  ;;  %v970_v59 = vrot.slane %v936_v50, %v1920_v12  ;;  %v1222_v50 = vld [vmem:[#allocation5 + $0x18] sm:$0xff] }
 0x3f1   : > { %v966_v58 = vrot.slane %v933_v47, %v1923_v14 }
 0x3f3   : > { %v945_v53 = vpop.xlane.xlu1 %944  ;;  %v971_v42 = vsel %vm821_vm7, %v970_v59, %v966_v58 }
 0x3f4   : > { %v939_v51 = vpop.xlane.xlu0 %938  ;;  %v984_v0 = vrot.slane %v945_v53, %v1923_v14 }
 0x3f5   : > { %v975_v61 = vrot.slane %v939_v51, %v1923_v14 }
 0x3f7   : > { %v951_v30 = vpop.xlane.xlu1 %950 }
 0x3f8   : > { %v942_v54 = vpop.xlane.xlu0 %941  ;;  %v993_v3 = vrot.slane %v951_v30, %v1923_v14  ;;  %v1201_v14 = vrot.slane %v1715_v36, %v1200_v13 }
 0x3f9   : > { %v979_v56 = vrot.slane %v942_v54, %v1920_v12 }
 0x3fa   : > { %v1202_v16 = vcombine.high %v1201_v14, %v1201_v14 }
 0x3fb   : > { %v980_v35 = vsel %vm821_vm7, %v979_v56, %v975_v61  ;;  %v1327_v11 = vpop.permute.xlu1 %1326 }
 0x3fc   : > { %v948_v57 = vpop.xlane.xlu0 %947  ;;  %v999_v5 = vsel %vm850_vm6, %v980_v35, %v971_v42  ;;  %v1216_v63 = vrot.slane %v1202_v16, %v1200_v13 }
 0x3fd   : > { %v988_v62 = vrot.slane %v948_v57, %v1920_v12 }
 0x3fe   : > { %v1230_v10 = vrot.slane %v1216_v63, %v1942_v33  ;;  %v1218_v32 = vcombine.high %v1216_v63, %v1216_v63 }
 0x3ff   : > { %v989_v1 = vsel %vm821_vm7, %v988_v62, %v984_v0 }
 0x400   : > { %v954_v44 = vpop.xlane.xlu0 %953  ;;  %v1000_v46 = vsel %vm852_vm8, %v989_v1, %v999_v5  ;;  %v1244_v29 = vmul.f32 %v1230_v10, %v1220_v26  ;;  %v1238_v45 = vrot.slane %v1218_v32, %v1942_v33 }
 0x401   : > { %v997_v4 = vrot.slane %v954_v44, %v1920_v12  ;;  %v1209_v12 = vrot.slane %v1201_v14, %v1200_v13 }
 0x402   : > { %v1246_v57 = vmul.f32 %v1238_v45, %v1222_v50 }
 0x403   : > { %v998_v6 = vsel %vm821_vm7, %v997_v4, %v993_v3  ;;  %v1226_v49 = vrot.slane %v1209_v12, %v1942_v33  ;;  %v1217_v24 = vcombine.high %v1209_v12, %v1209_v12 }
 0x404   : > { %v1001_v7 = vsel %vm854_vm9, %v998_v6, %v1000_v46 }
 0x405   : > { %v1003_v8 = vadd.f32 %v1001_v7, %v930_v52  ;;  %v1243_v18 = vmul.f32 %v1226_v49, %v1219_v17  ;;  %v1234_v28 = vrot.slane %v1217_v24, %v1942_v33 }
 0x407   : > { %1005 = vst.msk [vmem:[#allocation4] sm:$0xf] %vm498_vm1, %v1003_v8  ;;  %v1245_v41 = vmul.f32 %v1234_v28, %v1221_v31 }
 0x408   : > { %v1332_v17 = vpop.permute.xlu0 %1331 }
 0x40e   : > { %v1259_v15 = vld [vmem:[#allocation4] sm:$0xf] }
 0x40f   : > { %1716 = vrcp.f32 %v1259_v15 }
 0x419   : > { %v1717_v22 = vpop.eup %1716 }
 0x41a   : > { %v1272_v27 = vrot.slane %v1717_v22, %v1200_v13 }
 0x41c   : > { %v1273_v39 = vcombine.high %v1272_v27, %v1272_v27  ;;  %v1280_v53 = vrot.slane %v1272_v27, %v1200_v13 }
 0x41e   : > { %v1287_v54 = vrot.slane %v1273_v39, %v1200_v13  ;;  %v1293_v0 = vrot.slane %v1280_v53, %v1942_v33  ;;  %v1288_v3 = vcombine.high %v1280_v53, %v1280_v53  ;;  %v1337_v13 = vpop.permute.xlu1 %1336 }
 0x420   : > { %v1297_v30 = vrot.slane %v1287_v54, %v1942_v33  ;;  %v1289_v4 = vcombine.high %v1287_v54, %v1287_v54  ;;  %v1301_v46 = vrot.slane %v1288_v3, %v1942_v33 }
 0x422   : > { %v1305_v52 = vrot.slane %v1289_v4, %v1942_v33  ;;  %v1342_v12 = vpop.permute.xlu1 %1341 }
 0x43f   : > { %v1050_v19 = vpop.f32.mrb[8].mxu0 }
 0x440   : > { %v1247_v20 = vadd.f32 %v1243_v18, %v1050_v19  ;;  %v1633_v21 = vpop.f32.mrb[9].mxu0 }
 0x441   : > { %v1053_v23 = vpop.f32.mrb[10].mxu0 }
 0x442   : > { %1251 = vst.msk [vmem:[#allocation5] sm:$0xff] %vm505_vm5, %v1247_v20  ;;  %v1634_v25 = vpop.f32.mrb[11].mxu0 }
 0x447   : > { %v1096_v34 = vpop.f32.mrb[12].mxu1 }
 0x448   : > { %v1248_v37 = vadd.f32 %v1244_v29, %v1096_v34  ;;  %v1639_v38 = vpop.f32.mrb[13].mxu1 }
 0x449   : > { %v1099_v40 = vpop.f32.mrb[14].mxu1  ;;  %v1261_v59 = vld [vmem:[#allocation5] sm:$0xff] }
 0x44a   : > { %1252 = vst.msk [vmem:[#allocation5 + $0x8] sm:$0xff] %vm505_vm5, %v1248_v37  ;;  %v1640_v43 = vpop.f32.mrb[15].mxu1  ;;  %v1142_v9 = vpop.f32.mrb[12].mxu0  ;;  %v1310_v2 = vmul.f32 %v1293_v0, %v1261_v59 }
 0x44b   : > { %v1249_v47 = vadd.f32 %v1245_v41, %v1142_v9  ;;  %v1645_v48 = vpop.f32.mrb[13].mxu0 }
 0x44c   : > { %v1145_v51 = vpop.f32.mrb[14].mxu0 }
 0x44d   : > { %1253 = vst.msk [vmem:[#allocation5 + $0x10] sm:$0xff] %vm505_vm5, %v1249_v47  ;;  %v1646_v56 = vpop.f32.mrb[15].mxu0 }
 0x44f   : > { %v1188_v58 = vpop.f32.mrb[16].mxu1 }
 0x450   : > { %v1250_v61 = vadd.f32 %v1246_v57, %v1188_v58  ;;  %v1651_v62 = vpop.f32.mrb[17].mxu1 }
 0x451   : > { %v1191_v35 = vpop.f32.mrb[18].mxu1  ;;  %v1262_v36 = vld [vmem:[#allocation5 + $0x8] sm:$0xff] }
 0x452   : > { %1254 = vst.msk [vmem:[#allocation5 + $0x18] sm:$0xff] %vm505_vm5, %v1250_v61  ;;  %v1652_v1 = vpop.f32.mrb[19].mxu1  ;;  %v1311_v44 = vmul.f32 %v1297_v30, %v1262_v36 }
 0x454   : > { %v1318_v42 = vpack.c.bf16 %v1311_v44, %v1310_v2  ;;  %v1263_v5 = vld [vmem:[#allocation5 + $0x10] sm:$0xff] }
 0x455   : > { %v1312_v7 = vmul.f32 %v1301_v46, %v1263_v5 }
 0x456   : > { %1653 = vmatprep.subr.bf16.mxu0 %v1318_v42 }
 0x457   : > { %1654 = vmatpush3.bf16.msra.mxu0 %v1318_v42 }
 0x459   : > { %v1264_v6 = vld [vmem:[#allocation5 + $0x18] sm:$0xff] }
 0x45a   : > { %v1313_v8 = vmul.f32 %v1305_v52, %v1264_v6 }
 0x45c   : > { %v1319_v60 = vpack.c.bf16 %v1313_v8, %v1312_v7 }
 0x45e   : > { %1655 = vmatprep.subr.bf16.mxu0 %v1319_v60 }
 0x45f   : > { %1656 = vmatpush3.bf16.msra.mxu0 %v1319_v60 }
 0x462   : > { %1658 = vmatmul.mubr.msk.bf16.vlgmr.msra.gmra.mrb[16].mxu0 %vm438_vm0, %v1697_v55 }
 0x535   : > { %v1659_v33 = vpop.f32.mrb[16].mxu0 }
 0x536   : > { %v1404_v14 = vadd.f32 %v1659_v33, %v1337_v13  ;;  %v1395_v15 = vpop.f32.mrb[17].mxu0 }
 0x537   : > { %v1396_v49 = vadd.f32 %v1395_v15, %v1327_v11  ;;  %v1660_v16 = vpop.f32.mrb[18].mxu0 }
 0x538   : > { %1412 = vst.msk [vmem:[%s378_s23 + $0x10] sm:$0xff] %vm505_vm5, %v1404_v14  ;;  %v1407_v18 = vadd.f32 %v1660_v16, %v1342_v12  ;;  %v1398_v63 = vpop.f32.mrb[19].mxu0 }
 0x539   : > { %1410 = vst.msk [vmem:[%s378_s23] sm:$0xff] %vm505_vm5, %v1396_v49  ;;  %v1399_v19 = vadd.f32 %v1398_v63, %v1332_v17 }
 0x53a   : > { %1413 = vst.msk [vmem:[%s378_s23 + $0x18] sm:$0xff] %vm505_vm5, %v1407_v18 }
 0x53b   : > { %1411 = vst.msk [vmem:[%s378_s23 + $0x8] sm:$0xff] %vm505_vm5, %v1399_v19 }
 0x53c PF: > { %s17_s26 = sadd.s32 1, %s1740_s26   ;;  %s2077_s24 = smov %s1736_s25 }
 0x53d   : > { %p14_p5 = scmp.ge.s32.totalorder %s17_s26, 4   ;;  %s2078_s25 = smov %s2080_s27 }
 0x53f   :  { %16 = sbr.rel (!%p14_p5) target bundleno = 2 (0x2), region = 92 }

</bundles_post_ra>
